<compile_context>
chip_gen: v7x
topology: tpu7x:2x2x1
jax: 0.10.0
libtpu: 0.0.40
codegen_flags: <defaults>
</compile_context>

<pallas_src>
import functools

import jax
import jax.numpy as jnp
import numpy as np
from jax.experimental import pallas as pl
from jax.experimental.pallas import tpu as pltpu


# ----------------------------- model config ---------------------------------
MAX_TEXT_LENGTH = 8
LSTM_SIZE = 4
LAYER_SIZES = [128, 64, 12]

NUM_STATS = 5
RACE_EMB_DIM = 4
CLASS_EMB_DIM = 4
INPUT_DIM = MAX_TEXT_LENGTH * (2 * LSTM_SIZE) + RACE_EMB_DIM + CLASS_EMB_DIM + NUM_STATS  # 77

# Full layer chain of forward() (encoder then decoder), ReLU after every layer.
LAYER_DIMS = (
    [INPUT_DIM] + LAYER_SIZES                         # encoder: 77 -> 128 -> 64 -> 12
    + list(reversed(LAYER_SIZES[:-1])) + [INPUT_DIM]  # decoder: 12 -> 64 -> 128 -> 77
)
NUM_LAYERS = len(LAYER_DIMS) - 1  # 6

LANE = 128
SUBLANE = 8


def _round_up(x, m):
    return (x + m - 1) // m * m


# Uniform padded feature width (all feature dims in this model are <= 128).
D_PAD = _round_up(max(LAYER_DIMS), LANE)  # 128

# Batch tile (rows per grid step).  2048 rows amortizes per-step overhead while
# keeping VMEM use ~4-5 MiB (in f32 + out bf16 double-buffered + 1 MiB scratch
# + 196 KiB resident bf16 weights) — comfortably under the 32 MiB scoped
# default on v5e/v6e/v7x.
TB_DEFAULT = 2048


# ------------------------------ Pallas kernel -------------------------------
def _mlp_kernel(x_ref, w_ref, b_ref, out_ref, xp_ref):
    """One batch tile through the full 6-layer ReLU MLP.

    x_ref:   (TB, INPUT_DIM)             input activations for this batch tile
    w_ref:   (NUM_LAYERS, D_PAD, D_PAD)  bf16 packed, zero-padded weights (resident)
    b_ref:   (SUBLANE, D_PAD)            f32 packed biases (rows 0..NUM_LAYERS-1)
    out_ref: (TB, INPUT_DIM)             output tile (bf16 by default)
    xp_ref:  (TB, D_PAD) f32 VMEM scratch used to lane-pad the input tile
    """
    # 1) Zero-pad the tile to the 128-lane width entirely in VMEM.  Padded
    #    lanes stay exactly zero through every layer (zero weight rows/cols +
    #    zero bias + ReLU).  Re-zeroed every step so megacore sharding of the
    #    batch-tile axis is safe.
    xp_ref[...] = jnp.zeros(xp_ref.shape, jnp.float32)
    xp_ref[:, :INPUT_DIM] = x_ref[...].astype(jnp.float32)
    h = xp_ref[...]                                     # (TB, D_PAD) f32

    # 2) Six (bf16 MXU matmul, f32 accumulate) layers; bias + ReLU stay in f32
    #    on the VPU (v5e has no bf16 VALU path).
    for i in range(NUM_LAYERS):
        w = w_ref[i]                                    # (D_PAD, D_PAD) bf16, static index
        b = b_ref[i:i + 1, :]                           # (1, D_PAD) f32, broadcasts over rows
        h = jnp.dot(h.astype(jnp.bfloat16), w, preferred_element_type=jnp.float32)
        h = jnp.maximum(h + b, 0.0)

    # 3) Drop the padded lanes and store once in the (narrower) output dtype.
    out_ref[...] = h[:, :INPUT_DIM].astype(out_ref.dtype)


# --------------------------- parameter packing -------------------------------
def pack_params(weights, biases):
    """Pad/pack parameters ONCE (hoisted out of the forward path).

    weights[i]: (in_i, out_i) f32, biases[i]: (out_i,) f32  (y = x @ W + b layout,
    i.e. the TRANSPOSE of PyTorch's (out, in) nn.Linear weight).

    Returns:
      w_packed: (NUM_LAYERS, D_PAD, D_PAD) bf16, zero padded per layer
      b_packed: (SUBLANE, D_PAD) f32, row i = bias of layer i, remaining rows zero
    """
    assert len(weights) == NUM_LAYERS and len(biases) == NUM_LAYERS
    w_packed = jnp.zeros((NUM_LAYERS, D_PAD, D_PAD), jnp.float32)
    b_packed = jnp.zeros((SUBLANE, D_PAD), jnp.float32)
    for i in range(NUM_LAYERS):
        di, do = LAYER_DIMS[i], LAYER_DIMS[i + 1]
        wi = jnp.asarray(weights[i], jnp.float32)
        bi = jnp.asarray(biases[i], jnp.float32)
        # Guard against feeding raw PyTorch (out, in) weights without transposing.
        assert wi.shape == (di, do), f"layer {i}: expected ({di},{do}), got {wi.shape}"
        assert bi.shape == (do,), f"layer {i}: expected bias ({do},), got {bi.shape}"
        w_packed = w_packed.at[i, :di, :do].set(wi)
        b_packed = b_packed.at[i, :do].set(bi)
    return w_packed.astype(jnp.bfloat16), b_packed


# ------------------------------- forward -------------------------------------
@functools.partial(jax.jit, static_argnames=("out_dtype",))
def autoencoder_forward(x, w_packed, b_packed, out_dtype=jnp.bfloat16):
    """x: (batch, INPUT_DIM) -> (batch, INPUT_DIM) in `out_dtype`.

    Matches PyTorch Autoencoder.forward (every linear followed by ReLU), with
    the matmuls executed in bf16 on the MXU (f32 accumulation).  Pass bf16 `x`
    to halve input DMA; pass out_dtype=jnp.float32 for an f32 output.
    """
    batch = x.shape[0]
    assert x.shape[1] == INPUT_DIM, f"expected (batch, {INPUT_DIM}), got {x.shape}"

    # Pad the batch only to a multiple of 8 (sublane), and only when needed.
    b8 = _round_up(max(batch, SUBLANE), SUBLANE)
    if b8 != batch:
        x = jnp.pad(x, ((0, b8 - batch), (0, 0)))

    tb = min(TB_DEFAULT, b8)
    grid = (pl.cdiv(b8, tb),)   # trailing partial block handled by the pipeline

    flops = 2 * NUM_LAYERS * b8 * D_PAD * D_PAD
    bytes_accessed = (
        b8 * INPUT_DIM * x.dtype.itemsize                 # activations in
        + b8 * INPUT_DIM * jnp.dtype(out_dtype).itemsize  # activations out
        + NUM_LAYERS * D_PAD * D_PAD * 2                  # bf16 weights (loaded once)
        + SUBLANE * D_PAD * 4                             # biases
    )

    out = pl.pallas_call(
        _mlp_kernel,
        out_shape=jax.ShapeDtypeStruct((b8, INPUT_DIM), out_dtype),
        grid=grid,
        in_specs=[
            # Activations stream tile-by-tile at their true 77-lane width
            # (double-buffered by the pipeline).
            pl.BlockSpec((tb, INPUT_DIM), lambda i: (i, 0)),
            # Weights/biases: constant block index -> DMA'd once, VMEM-resident.
            pl.BlockSpec((NUM_LAYERS, D_PAD, D_PAD), lambda i: (0, 0, 0)),
            pl.BlockSpec((SUBLANE, D_PAD), lambda i: (0, 0)),
        ],
        out_specs=pl.BlockSpec((tb, INPUT_DIM), lambda i: (i, 0)),
        scratch_shapes=[pltpu.VMEM((tb, D_PAD), jnp.float32)],
        compiler_params=pltpu.CompilerParams(
            # Batch tiles are independent.  (On v7x, pltpu.CORE_PARALLEL here
            # splits the tile loop across both TensorCores; kept at "parallel"
            # for portability to single-core v5e/v6e.)
            dimension_semantics=("parallel",),
        ),
        cost_estimate=pl.CostEstimate(
            flops=flops, transcendentals=0, bytes_accessed=bytes_accessed
        ),
    )(x, w_packed, b_packed)

    return out if b8 == batch else out[:batch]


# --------------------------- deterministic init ------------------------------
def init_params(key):
    """PyTorch nn.Linear-style init: U(-1/sqrt(fan_in), 1/sqrt(fan_in))."""
    weights, biases = [], []
    for i in range(NUM_LAYERS):
        di, do = LAYER_DIMS[i], LAYER_DIMS[i + 1]
        key, kw, kb = jax.random.split(key, 3)
        bound = 1.0 / np.sqrt(di)
        weights.append(jax.random.uniform(kw, (di, do), jnp.float32, -bound, bound))
        biases.append(jax.random.uniform(kb, (do,), jnp.float32, -bound, bound))
    return weights, biases


def reference_forward_f32(x, weights, biases):
    h = x
    for i in range(NUM_LAYERS):
        h = jnp.maximum(h @ weights[i] + biases[i], 0.0)
    return h


def reference_forward_bf16(x, weights, biases):
    """Same mixed precision as the kernel (bf16 MXU matmul, f32 accumulate)."""
    h = x
    for i in range(NUM_LAYERS):
        h = jnp.dot(h.astype(jnp.bfloat16), weights[i].astype(jnp.bfloat16),
                    preferred_element_type=jnp.float32) + biases[i]
        h = jnp.maximum(h, 0.0)
    return h


if __name__ == "__main__":
    key = jax.random.PRNGKey(0)
    kx, kx2, kp = jax.random.split(key, 3)

    weights, biases = init_params(kp)
    # Pad/pack the parameters once (hoisted out of the per-call path).
    w_packed, b_packed = pack_params(weights, biases)

    # --- case 1: small batch (batch=2) ---
    batch = 2
    x = jax.random.normal(kx, (batch, INPUT_DIM), jnp.float32)
    out = autoencoder_forward(x, w_packed, b_packed)
    out = jax.block_until_ready(out)
    assert out.shape == (batch, INPUT_DIM)

    out_f32 = np.asarray(out.astype(jnp.float32))
    # Tight check against a reference using the same bf16/f32-accum matmul path
    # (tolerance covers the final bf16 rounding of the output tile).
    ref_bf16 = np.asarray(reference_forward_bf16(x, weights, biases))
    np.testing.assert_allclose(out_f32, ref_bf16, rtol=1e-2, atol=1e-2)
    # Loose check against the pure-f32 PyTorch-equivalent reference.
    ref_f32 = np.asarray(reference_forward_f32(x, weights, biases))
    np.testing.assert_allclose(out_f32, ref_f32, rtol=5e-2, atol=5e-2)

    # --- case 2: non-multiple-of-8 batch (exercises the conditional row pad) ---
    x2 = jax.random.normal(kx2, (10, INPUT_DIM), jnp.float32)
    out2 = jax.block_until_ready(autoencoder_forward(x2, w_packed, b_packed))
    assert out2.shape == (10, INPUT_DIM)
    ref2 = np.asarray(reference_forward_bf16(x2, weights, biases))
    np.testing.assert_allclose(np.asarray(out2.astype(jnp.float32)), ref2,
                               rtol=1e-2, atol=1e-2)

    print("KERNEL_OK")
</pallas_src>

<mosaic_0001>
module attributes {stable_mosaic.version = 11 : i64} {
  func.func @_mlp_kernel(%arg0: i32, %arg1: memref<8x77xf32, #tpu.memory_space<vmem>>, %arg2: memref<6x128x128xbf16, #tpu.memory_space<vmem>>, %arg3: memref<8x128xf32, #tpu.memory_space<vmem>>, %arg4: memref<8x77xbf16, #tpu.memory_space<vmem>>, %arg5: memref<8x128xf32, #tpu.memory_space<vmem>>) attributes {dimension_semantics = [#tpu.dimension_semantics<parallel>], iteration_bounds = array<i64: 1>, scalar_prefetch = 0 : i64, scratch_operands = 1 : i64, tpu.core_type = #tpu.core_type<tc>, window_params = [{transform_indices = @transform_0, window_bounds = array<i64: 8, 77>}, {pipeline_mode = #tpu.pipeline_mode<synchronous>, transform_indices = @transform_1, window_bounds = array<i64: 6, 128, 128>}, {pipeline_mode = #tpu.pipeline_mode<synchronous>, transform_indices = @transform_2, window_bounds = array<i64: 8, 128>}, {transform_indices = @transform_3, window_bounds = array<i64: 8, 77>}]} {
    %cst = arith.constant 0.000000e+00 : f32
    %0 = vector.broadcast %cst : f32 to vector<8x128xf32>
    %c0 = arith.constant 0 : index
    %c0_0 = arith.constant 0 : index
    %1 = vector.load %arg5[%c0, %c0_0] : memref<8x128xf32, #tpu.memory_space<vmem>>, vector<8x128xf32>
    tpu.vector_store %arg5[%c0, %c0_0], %0 {strides = array<i32>} : memref<8x128xf32, #tpu.memory_space<vmem>>, vector<8x128xf32>,
    %c0_1 = arith.constant 0 : index
    %c0_2 = arith.constant 0 : index
    %2 = vector.load %arg1[%c0_1, %c0_2] : memref<8x77xf32, #tpu.memory_space<vmem>>, vector<8x77xf32>
    %c0_3 = arith.constant 0 : index
    %c0_4 = arith.constant 0 : index
    %3 = vector.load %arg5[%c0_3, %c0_4] : memref<8x128xf32, #tpu.memory_space<vmem>>, vector<8x77xf32>
    tpu.vector_store %arg5[%c0_3, %c0_4], %2 {strides = array<i32>} : memref<8x128xf32, #tpu.memory_space<vmem>>, vector<8x77xf32>,
    %c0_5 = arith.constant 0 : index
    %c0_6 = arith.constant 0 : index
    %4 = vector.load %arg5[%c0_5, %c0_6] : memref<8x128xf32, #tpu.memory_space<vmem>>, vector<8x128xf32>
    %c0_7 = arith.constant 0 : index
    %c0_8 = arith.constant 0 : index
    %c0_9 = arith.constant 0 : index
    %5 = vector.load %arg2[%c0_7, %c0_8, %c0_9] : memref<6x128x128xbf16, #tpu.memory_space<vmem>>, vector<1x128x128xbf16>
    %6 = vector.shape_cast %5 : vector<1x128x128xbf16> to vector<128x128xbf16>
    %c0_10 = arith.constant 0 : index
    %c0_11 = arith.constant 0 : index
    %7 = vector.load %arg3[%c0_10, %c0_11] : memref<8x128xf32, #tpu.memory_space<vmem>>, vector<1x128xf32>
    %8 = arith.truncf %4 : vector<8x128xf32> to vector<8x128xbf16>
    %cst_12 = arith.constant dense<0.000000e+00> : vector<8x128xf32>
    %9 = tpu.matmul %8, %6, %cst_12 {dimension_numbers = #tpu.dot_dimension_numbers<[1], [0], [0], [1], [0, 0, 1, 1], [], []>} : vector<8x128xbf16>, vector<128x128xbf16>, vector<8x128xf32> -> vector<8x128xf32>
    %10 = vector.broadcast %7 : vector<1x128xf32> to vector<8x128xf32>
    %11 = arith.addf %9, %10 : vector<8x128xf32>
    %cst_13 = arith.constant 0.000000e+00 : f32
    %12 = vector.broadcast %cst_13 : f32 to vector<8x128xf32>
    %13 = arith.maximumf %11, %12 : vector<8x128xf32>
    %c1 = arith.constant 1 : index
    %c0_14 = arith.constant 0 : index
    %c0_15 = arith.constant 0 : index
    %14 = vector.load %arg2[%c1, %c0_14, %c0_15] : memref<6x128x128xbf16, #tpu.memory_space<vmem>>, vector<1x128x128xbf16>
    %15 = vector.shape_cast %14 : vector<1x128x128xbf16> to vector<128x128xbf16>
    %c1_16 = arith.constant 1 : index
    %c0_17 = arith.constant 0 : index
    %16 = vector.load %arg3[%c1_16, %c0_17] : memref<8x128xf32, #tpu.memory_space<vmem>>, vector<1x128xf32>
    %17 = arith.truncf %13 : vector<8x128xf32> to vector<8x128xbf16>
    %cst_18 = arith.constant dense<0.000000e+00> : vector<8x128xf32>
    %18 = tpu.matmul %17, %15, %cst_18 {dimension_numbers = #tpu.dot_dimension_numbers<[1], [0], [0], [1], [0, 0, 1, 1], [], []>} : vector<8x128xbf16>, vector<128x128xbf16>, vector<8x128xf32> -> vector<8x128xf32>
    %19 = vector.broadcast %16 : vector<1x128xf32> to vector<8x128xf32>
    %20 = arith.addf %18, %19 : vector<8x128xf32>
    %cst_19 = arith.constant 0.000000e+00 : f32
    %21 = vector.broadcast %cst_19 : f32 to vector<8x128xf32>
    %22 = arith.maximumf %20, %21 : vector<8x128xf32>
    %c2 = arith.constant 2 : index
    %c0_20 = arith.constant 0 : index
    %c0_21 = arith.constant 0 : index
    %23 = vector.load %arg2[%c2, %c0_20, %c0_21] : memref<6x128x128xbf16, #tpu.memory_space<vmem>>, vector<1x128x128xbf16>
    %24 = vector.shape_cast %23 : vector<1x128x128xbf16> to vector<128x128xbf16>
    %c2_22 = arith.constant 2 : index
    %c0_23 = arith.constant 0 : index
    %25 = vector.load %arg3[%c2_22, %c0_23] : memref<8x128xf32, #tpu.memory_space<vmem>>, vector<1x128xf32>
    %26 = arith.truncf %22 : vector<8x128xf32> to vector<8x128xbf16>
    %cst_24 = arith.constant dense<0.000000e+00> : vector<8x128xf32>
    %27 = tpu.matmul %26, %24, %cst_24 {dimension_numbers = #tpu.dot_dimension_numbers<[1], [0], [0], [1], [0, 0, 1, 1], [], []>} : vector<8x128xbf16>, vector<128x128xbf16>, vector<8x128xf32> -> vector<8x128xf32>
    %28 = vector.broadcast %25 : vector<1x128xf32> to vector<8x128xf32>
    %29 = arith.addf %27, %28 : vector<8x128xf32>
    %cst_25 = arith.constant 0.000000e+00 : f32
    %30 = vector.broadcast %cst_25 : f32 to vector<8x128xf32>
    %31 = arith.maximumf %29, %30 : vector<8x128xf32>
    %c3 = arith.constant 3 : index
    %c0_26 = arith.constant 0 : index
    %c0_27 = arith.constant 0 : index
    %32 = vector.load %arg2[%c3, %c0_26, %c0_27] : memref<6x128x128xbf16, #tpu.memory_space<vmem>>, vector<1x128x128xbf16>
    %33 = vector.shape_cast %32 : vector<1x128x128xbf16> to vector<128x128xbf16>
    %c3_28 = arith.constant 3 : index
    %c0_29 = arith.constant 0 : index
    %34 = vector.load %arg3[%c3_28, %c0_29] : memref<8x128xf32, #tpu.memory_space<vmem>>, vector<1x128xf32>
    %35 = arith.truncf %31 : vector<8x128xf32> to vector<8x128xbf16>
    %cst_30 = arith.constant dense<0.000000e+00> : vector<8x128xf32>
    %36 = tpu.matmul %35, %33, %cst_30 {dimension_numbers = #tpu.dot_dimension_numbers<[1], [0], [0], [1], [0, 0, 1, 1], [], []>} : vector<8x128xbf16>, vector<128x128xbf16>, vector<8x128xf32> -> vector<8x128xf32>
    %37 = vector.broadcast %34 : vector<1x128xf32> to vector<8x128xf32>
    %38 = arith.addf %36, %37 : vector<8x128xf32>
    %cst_31 = arith.constant 0.000000e+00 : f32
    %39 = vector.broadcast %cst_31 : f32 to vector<8x128xf32>
    %40 = arith.maximumf %38, %39 : vector<8x128xf32>
    %c4 = arith.constant 4 : index
    %c0_32 = arith.constant 0 : index
    %c0_33 = arith.constant 0 : index
    %41 = vector.load %arg2[%c4, %c0_32, %c0_33] : memref<6x128x128xbf16, #tpu.memory_space<vmem>>, vector<1x128x128xbf16>
    %42 = vector.shape_cast %41 : vector<1x128x128xbf16> to vector<128x128xbf16>
    %c4_34 = arith.constant 4 : index
    %c0_35 = arith.constant 0 : index
    %43 = vector.load %arg3[%c4_34, %c0_35] : memref<8x128xf32, #tpu.memory_space<vmem>>, vector<1x128xf32>
    %44 = arith.truncf %40 : vector<8x128xf32> to vector<8x128xbf16>
    %cst_36 = arith.constant dense<0.000000e+00> : vector<8x128xf32>
    %45 = tpu.matmul %44, %42, %cst_36 {dimension_numbers = #tpu.dot_dimension_numbers<[1], [0], [0], [1], [0, 0, 1, 1], [], []>} : vector<8x128xbf16>, vector<128x128xbf16>, vector<8x128xf32> -> vector<8x128xf32>
    %46 = vector.broadcast %43 : vector<1x128xf32> to vector<8x128xf32>
    %47 = arith.addf %45, %46 : vector<8x128xf32>
    %cst_37 = arith.constant 0.000000e+00 : f32
    %48 = vector.broadcast %cst_37 : f32 to vector<8x128xf32>
    %49 = arith.maximumf %47, %48 : vector<8x128xf32>
    %c5 = arith.constant 5 : index
    %c0_38 = arith.constant 0 : index
    %c0_39 = arith.constant 0 : index
    %50 = vector.load %arg2[%c5, %c0_38, %c0_39] : memref<6x128x128xbf16, #tpu.memory_space<vmem>>, vector<1x128x128xbf16>
    %51 = vector.shape_cast %50 : vector<1x128x128xbf16> to vector<128x128xbf16>
    %c5_40 = arith.constant 5 : index
    %c0_41 = arith.constant 0 : index
    %52 = vector.load %arg3[%c5_40, %c0_41] : memref<8x128xf32, #tpu.memory_space<vmem>>, vector<1x128xf32>
    %53 = arith.truncf %49 : vector<8x128xf32> to vector<8x128xbf16>
    %cst_42 = arith.constant dense<0.000000e+00> : vector<8x128xf32>
    %54 = tpu.matmul %53, %51, %cst_42 {dimension_numbers = #tpu.dot_dimension_numbers<[1], [0], [0], [1], [0, 0, 1, 1], [], []>} : vector<8x128xbf16>, vector<128x128xbf16>, vector<8x128xf32> -> vector<8x128xf32>
    %55 = vector.broadcast %52 : vector<1x128xf32> to vector<8x128xf32>
    %56 = arith.addf %54, %55 : vector<8x128xf32>
    %cst_43 = arith.constant 0.000000e+00 : f32
    %57 = vector.broadcast %cst_43 : f32 to vector<8x128xf32>
    %58 = arith.maximumf %56, %57 : vector<8x128xf32>
    %59 = vector.extract_strided_slice %58 {offsets = [0, 0], sizes = [8, 77], strides = [1, 1]} : vector<8x128xf32> to vector<8x77xf32>
    %60 = arith.truncf %59 : vector<8x77xf32> to vector<8x77xbf16>
    %c0_44 = arith.constant 0 : index
    %c0_45 = arith.constant 0 : index
    %61 = vector.load %arg4[%c0_44, %c0_45] : memref<8x77xbf16, #tpu.memory_space<vmem>>, vector<8x77xbf16>
    tpu.vector_store %arg4[%c0_44, %c0_45], %60 {strides = array<i32>} : memref<8x77xbf16, #tpu.memory_space<vmem>>, vector<8x77xbf16>,
    return
  }
  func.func @transform_0(%arg0: i32) -> (i32, i32) {
    %c0_i32 = arith.constant 0 : i32
    %c0_i32_0 = arith.constant 0 : i32
    return %arg0, %c0_i32 : i32, i32
  }
  func.func @transform_1(%arg0: i32) -> (i32, i32, i32) {
    %c0_i32 = arith.constant 0 : i32
    %c0_i32_0 = arith.constant 0 : i32
    %c0_i32_1 = arith.constant 0 : i32
    %c0_i32_2 = arith.constant 0 : i32
    return %c0_i32, %c0_i32_0, %c0_i32_1 : i32, i32, i32
  }
  func.func @transform_2(%arg0: i32) -> (i32, i32) {
    %c0_i32 = arith.constant 0 : i32
    %c0_i32_0 = arith.constant 0 : i32
    %c0_i32_1 = arith.constant 0 : i32
    return %c0_i32, %c0_i32_0 : i32, i32
  }
  func.func @transform_3(%arg0: i32) -> (i32, i32) {
    %c0_i32 = arith.constant 0 : i32
    %c0_i32_0 = arith.constant 0 : i32
    return %arg0, %c0_i32 : i32, i32
  }
}

</mosaic_0001>

<bundles_post_ra>
// kernel: autoencoder_forward.1
= control target key start
LH: loop header
LB: loop body
LE: loop exit
PB: predicated region body
PF: predicated region fallthrough
CT: control target
= control target key end

     0   :  { %8 = vsyncpa [#allocation4], 0  ;;  %s1018_s12 = smov [#allocation3]   ;;  %s1140_s0 = inlined_call_operand.vmem [shape: f32[8,77], index: 0, kind: input, shape index: {}]   ;;  %s1141_s1 = inlined_call_operand.hbm [shape: bf16[6,128,128], index: 1, kind: input, shape index: {}]   ;;  %s1142_s2 = inlined_call_operand.vmem [shape: f32[8,128], index: 2, kind: input, shape index: {}]   ;;  %s1143_s3 = inlined_call_operand.vmem [shape: bf16[8,77], index: 3, kind: output, shape index: {}]  }
   0x1   :  { %s16_s13 = sshll.u32 %s1018_s12, 4  ;;  %s994_s16 = scalar_lea.hbm %s1141_s1, 6144  ;;  %s17_s13 = int_to_ptr.vmem [resolvable:$true] %s16_s13 }
   0x2   :  { %p995_p0 = scmp.ne.s32.totalorder %s1141_s1, %s994_s16  ;;  %p998_p1 = scmp.lt.u32.totalorder %s994_s16, %s1141_s1 }
   0x4   :  { %p1000_p2 = pnand %p998_p1, %p995_p0 }
   0x6   :  { %1003 = shalt.err (!%p1000_p2)
}
   0x7   :  { %s1004_s21 = scalar_lea.vmem %s17_s13, 6144  ;;  %p1009_p4 = scmp.lt.s32.totalorder %s17_s13, %s17_s13 }
   0x8   :  { %p1005_p3 = scmp.ne.s32.totalorder %s17_s13, %s1004_s21  ;;  %p1010_p5 = scmp.lt.s32.totalorder %s1004_s21, %s1004_s21 }
   0xa   :  { %p1011_p6 = por %p1010_p5, %p1009_p4 }
   0xc   :  { %p1012_p7 = pnand %p1011_p6, %p1005_p3 }
   0xe   :  { %1015 = shalt.err (!%p1012_p7)
}
   0xf   :  { %s1019_s22 = smov 64   ;;  %s1020_s23 = smov 4  }
  0x10   :  { %22 = dma.hbm_to_vmem [thread:$0]  %s1141_s1, 6144, %s17_s13, [#allocation4], %s1019_s22, %s1019_s22, %s1020_s23  }
  0x11   :  { %1016 = dma.done.wait [#allocation4], 6144  }
  0x12   :  { %1017 = vsyncadd [#allocation4], 4294961152  ;;  %v1021_v0 = vmov 0.0   ;;  %vm1022_vm0 = vmmov 0   ;;  %v946_v1 = vld [vmem:[#allocation3] sm:$0xff]   ;;  %v947_v2 = vld [vmem:[#allocation3 + $0x8] sm:$0xff]  }
  0x13   :  { %821 = vmatprep.subr.bf16.mxu0 %v1021_v0  ;;  %29 = vst [vmem:[#allocation2] sm:$0xff] %v1021_v0  ;;  %837 = vmatprep.mubr.msk.bf16.mxu0 %vm1022_vm0, %v1021_v0  ;;  %v948_v3 = vld [vmem:[#allocation3 + $0x10] sm:$0xff]   ;;  %vm31_vm1 = vcmask 629760   ;;  %v954_v5 = vld [vmem:[#allocation3 + $0x40] sm:$0xff]   ;;  %v949_v6 = vld [vmem:[#allocation3 + $0x18] sm:$0xff]   ;;  %vm706_vm2 = vcmask 625664  }
  0x14   :  { %841 = vmatprep.subr.bf16.mxu1 %v1021_v0  ;;  %857 = vmatprep.mubr.msk.bf16.mxu1 %vm1022_vm0, %v1021_v0  ;;  %v30_v4 = vld [vmem:[%s1140_s0] sm:$0xff]  ;;  %v955_v7 = vld [vmem:[#allocation3 + $0x48] sm:$0xff]   ;;  %v950_v8 = vld [vmem:[#allocation3 + $0x20] sm:$0xff]  }
  0x15   :  { %822 = vmatpush3.bf16.msra.mxu0 %v946_v1  ;;  %32 = vst.msk [vmem:[#allocation2] sm:$0xff] %vm31_vm1, %v30_v4  ;;  %842 = vmatpush3.bf16.msra.mxu1 %v954_v5  ;;  %v956_v9 = vld [vmem:[#allocation3 + $0x50] sm:$0xff]   ;;  %v951_v10 = vld [vmem:[#allocation3 + $0x28] sm:$0xff]   ;;  %v957_v11 = vld [vmem:[#allocation3 + $0x58] sm:$0xff]  }
  0x16   :  { %823 = vmatprep.subr.bf16.mxu0 %v1021_v0  ;;  %843 = vmatprep.subr.bf16.mxu1 %v1021_v0  ;;  %v952_v12 = vld [vmem:[#allocation3 + $0x30] sm:$0xff]   ;;  %v958_v13 = vld [vmem:[#allocation3 + $0x60] sm:$0xff]   ;;  %v953_v14 = vld [vmem:[#allocation3 + $0x38] sm:$0xff]  }
  0x17   :  { %v959_v16 = vld [vmem:[#allocation3 + $0x68] sm:$0xff]   ;;  %v960_v18 = vld [vmem:[#allocation3 + $0x70] sm:$0xff]   ;;  %v961_v19 = vld [vmem:[#allocation3 + $0x78] sm:$0xff]  }
  0x18   :  { %v962_v20 = vld [vmem:[#allocation3 + $0x80] sm:$0xff]   ;;  %v963_v21 = vld [vmem:[#allocation3 + $0x88] sm:$0xff]   ;;  %v964_v22 = vld [vmem:[#allocation3 + $0x90] sm:$0xff]  }
  0x19   :  { %824 = vmatpush3.bf16.msra.mxu0 %v947_v2  ;;  %844 = vmatpush3.bf16.msra.mxu1 %v955_v7  ;;  %v965_v23 = vld [vmem:[#allocation3 + $0x98] sm:$0xff]   ;;  %v966_v24 = vld [vmem:[#allocation3 + $0xa0] sm:$0xff]   ;;  %v967_v25 = vld [vmem:[#allocation3 + $0xa8] sm:$0xff]  }
  0x1a   :  { %825 = vmatprep.subr.bf16.mxu0 %v1021_v0  ;;  %845 = vmatprep.subr.bf16.mxu1 %v1021_v0  ;;  %v713_v26 = vld [vmem:[%s1142_s2] ss:$0 sm:$0xff]  ;;  %v969_v35 = vld [vmem:[#allocation3 + $0xb8] sm:$0xff]   ;;  %v970_v36 = vld [vmem:[#allocation3 + $0xc0] sm:$0xff]  }
  0x1b   :  { %v968_v34 = vld [vmem:[#allocation3 + $0xb0] sm:$0xff]   ;;  %v971_v37 = vld [vmem:[#allocation3 + $0xc8] sm:$0xff]   ;;  %v973_v39 = vld [vmem:[#allocation3 + $0xd8] sm:$0xff]  }
  0x1c   :  { %v33_v15 = vld [vmem:[#allocation2] sm:$0xff]  ;;  %v972_v38 = vld [vmem:[#allocation3 + $0xd0] sm:$0xff]   ;;  %v974_v40 = vld [vmem:[#allocation3 + $0xe0] sm:$0xff]  }
  0x1d   :  { %826 = vmatpush3.bf16.msra.mxu0 %v948_v3  ;;  %846 = vmatpush3.bf16.msra.mxu1 %v956_v9  ;;  %v51_v17 = vpack.c.bf16 %v33_v15, %v33_v15  ;;  %v975_v41 = vld [vmem:[#allocation3 + $0xe8] sm:$0xff]   ;;  %v722_v42 = vld [vmem:[%s1142_s2 + $0x1] ss:$0 sm:$0xff]  ;;  %v977_v51 = vld [vmem:[#allocation3 + $0xf8] sm:$0xff]  }
  0x1e   :  { %827 = vmatprep.subr.bf16.mxu0 %v1021_v0  ;;  %847 = vmatprep.subr.bf16.mxu1 %v1021_v0  ;;  %v976_v50 = vld [vmem:[#allocation3 + $0xf0] sm:$0xff]   ;;  %v978_v52 = vld [vmem:[#allocation3 + $0x100] sm:$0xff]   ;;  %v979_v53 = vld [vmem:[#allocation3 + $0x108] sm:$0xff]  }
  0x1f   :  { %v980_v54 = vld [vmem:[#allocation3 + $0x110] sm:$0xff]   ;;  %v981_v55 = vld [vmem:[#allocation3 + $0x118] sm:$0xff]   ;;  %v982_v56 = vld [vmem:[#allocation3 + $0x120] sm:$0xff]  }
  0x20   :  { %v983_v57 = vld [vmem:[#allocation3 + $0x128] sm:$0xff]   ;;  %v731_v58 = vld [vmem:[%s1142_s2 + $0x2] ss:$0 sm:$0xff]  ;;  %v985_v4 = vld [vmem:[#allocation3 + $0x138] sm:$0xff]  }
  0x21   :  { %828 = vmatpush3.bf16.msra.mxu0 %v949_v6  ;;  %848 = vmatpush3.bf16.msra.mxu1 %v957_v11  ;;  %v984_v3 = vld [vmem:[#allocation3 + $0x130] sm:$0xff]   ;;  %v986_v5 = vld [vmem:[#allocation3 + $0x140] sm:$0xff]   ;;  %v987_v6 = vld [vmem:[#allocation3 + $0x148] sm:$0xff]  }
  0x22   :  { %829 = vmatprep.subr.bf16.mxu0 %v1021_v0  ;;  %849 = vmatprep.subr.bf16.mxu1 %v1021_v0  ;;  %v988_v7 = vld [vmem:[#allocation3 + $0x150] sm:$0xff]   ;;  %v990_v9 = vld [vmem:[#allocation3 + $0x160] sm:$0xff]  }
  0x23   :  { %v740_v11 = vld [vmem:[%s1142_s2 + $0x3] ss:$0 sm:$0xff] }
  0x25   :  { %830 = vmatpush3.bf16.msra.mxu0 %v950_v8  ;;  %850 = vmatpush3.bf16.msra.mxu1 %v958_v13  ;;  %v989_v8 = vld [vmem:[#allocation3 + $0x158] sm:$0xff]  }
  0x26   :  { %831 = vmatprep.subr.bf16.mxu0 %v1021_v0  ;;  %851 = vmatprep.subr.bf16.mxu1 %v1021_v0 }
  0x29   :  { %832 = vmatpush3.bf16.msra.mxu0 %v951_v10  ;;  %852 = vmatpush3.bf16.msra.mxu1 %v959_v16  ;;  %v991_v10 = vld [vmem:[#allocation3 + $0x168] sm:$0xff]  }
  0x2a   :  { %833 = vmatprep.subr.bf16.mxu0 %v1021_v0  ;;  %853 = vmatprep.subr.bf16.mxu1 %v1021_v0 }
  0x2d   :  { %834 = vmatpush3.bf16.msra.mxu0 %v952_v12  ;;  %854 = vmatpush3.bf16.msra.mxu1 %v960_v18 }
  0x2e   :  { %835 = vmatprep.subr.bf16.mxu0 %v1021_v0  ;;  %855 = vmatprep.subr.bf16.mxu1 %v1021_v0 }
  0x31   :  { %836 = vmatpush3.bf16.msra.mxu0 %v953_v14  ;;  %856 = vmatpush3.bf16.msra.mxu1 %v961_v19  ;;  %v992_v19 = vld [vmem:[#allocation3 + $0x170] sm:$0xff]  }
  0x32   :  { %861 = vmatprep.subr.bf16.mxu0 %v1021_v0  ;;  %881 = vmatprep.subr.bf16.mxu1 %v1021_v0 }
  0x34   :  { %838 = vmatmul.mubr.bf16.vlgmr.msra.gmra.mrb[0].mxu0 %v51_v17 }
  0x35   :  { %877 = vmatprep.mubr.msk.bf16.mxu0 %vm1022_vm0, %v1021_v0  ;;  %862 = vmatpush3.bf16.msra.mxu0 %v962_v20  ;;  %v993_v20 = vld [vmem:[#allocation3 + $0x178] sm:$0xff]  }
  0x36   :  { %863 = vmatprep.subr.bf16.mxu0 %v1021_v0 }
  0x39   :  { %864 = vmatpush3.bf16.msra.mxu0 %v963_v21  ;;  %v749_v21 = vld [vmem:[%s1142_s2 + $0x4] ss:$0 sm:$0xff] }
  0x3a   :  { %865 = vmatprep.subr.bf16.mxu0 %v1021_v0 }
  0x3d   :  { %866 = vmatpush3.bf16.msra.mxu0 %v964_v22 }
  0x3e   :  { %867 = vmatprep.subr.bf16.mxu0 %v1021_v0 }
  0x41   :  { %868 = vmatpush3.bf16.msra.mxu0 %v965_v23 }
  0x42   :  { %869 = vmatprep.subr.bf16.mxu0 %v1021_v0 }
  0x45   :  { %870 = vmatpush3.bf16.msra.mxu0 %v966_v24 }
  0x46   :  { %871 = vmatprep.subr.bf16.mxu0 %v1021_v0 }
  0x49   :  { %872 = vmatpush3.bf16.msra.mxu0 %v967_v25 }
  0x4a   :  { %873 = vmatprep.subr.bf16.mxu0 %v1021_v0 }
  0x4d   :  { %874 = vmatpush3.bf16.msra.mxu0 %v968_v34 }
  0x4e   :  { %875 = vmatprep.subr.bf16.mxu0 %v1021_v0 }
  0x51   :  { %876 = vmatpush3.bf16.msra.mxu0 %v969_v35 }
  0x52   :  { %901 = vmatprep.subr.bf16.mxu0 %v1021_v0 }
 0x107   :  { %v138_v27 = vpop.f32.mrb[0].mxu0 }
 0x108   :  { %v139_v28 = vadd.f32 %v713_v26, %v138_v27  ;;  %v839_v29 = vpop.f32.mrb[1].mxu0 }
 0x109   :  { %v141_v30 = vpop.f32.mrb[2].mxu0  ;;  %v758_v29 = vld [vmem:[%s1142_s2 + $0x5] ss:$0 sm:$0xff] }
 0x10a   :  { %v144_v31 = vmax.f32 %v139_v28, 0.0  ;;  %v840_v32 = vpop.f32.mrb[3].mxu0 }
 0x10c   :  { %v163_v33 = vpack.c.bf16 %v144_v31, %v144_v31 }
 0x10e   :  { %858 = vmatmul.mubr.bf16.vlgmr.msra.gmra.mrb[0].mxu1 %v163_v33 }
 0x10f   :  { %897 = vmatprep.mubr.msk.bf16.mxu1 %vm1022_vm0, %v1021_v0  ;;  %882 = vmatpush3.bf16.msra.mxu1 %v970_v36 }
 0x110   :  { %883 = vmatprep.subr.bf16.mxu1 %v1021_v0 }
 0x113   :  { %884 = vmatpush3.bf16.msra.mxu1 %v971_v37 }
 0x114   :  { %885 = vmatprep.subr.bf16.mxu1 %v1021_v0 }
 0x117   :  { %886 = vmatpush3.bf16.msra.mxu1 %v972_v38 }
 0x118   :  { %887 = vmatprep.subr.bf16.mxu1 %v1021_v0 }
 0x11b   :  { %888 = vmatpush3.bf16.msra.mxu1 %v973_v39 }
 0x11c   :  { %889 = vmatprep.subr.bf16.mxu1 %v1021_v0 }
 0x11f   :  { %890 = vmatpush3.bf16.msra.mxu1 %v974_v40 }
 0x120   :  { %891 = vmatprep.subr.bf16.mxu1 %v1021_v0 }
 0x123   :  { %892 = vmatpush3.bf16.msra.mxu1 %v975_v41 }
 0x124   :  { %893 = vmatprep.subr.bf16.mxu1 %v1021_v0 }
 0x127   :  { %894 = vmatpush3.bf16.msra.mxu1 %v976_v50 }
 0x128   :  { %895 = vmatprep.subr.bf16.mxu1 %v1021_v0 }
 0x12b   :  { %896 = vmatpush3.bf16.msra.mxu1 %v977_v51 }
 0x12c   :  { %921 = vmatprep.subr.bf16.mxu1 %v1021_v0 }
 0x1e1   :  { %v250_v43 = vpop.f32.mrb[0].mxu1 }
 0x1e2   :  { %v251_v44 = vadd.f32 %v722_v42, %v250_v43  ;;  %v859_v45 = vpop.f32.mrb[1].mxu1 }
 0x1e3   :  { %v253_v46 = vpop.f32.mrb[2].mxu1 }
 0x1e4   :  { %v256_v47 = vmax.f32 %v251_v44, 0.0  ;;  %v860_v48 = vpop.f32.mrb[3].mxu1 }
 0x1e6   :  { %v275_v49 = vpack.c.bf16 %v256_v47, %v256_v47 }
 0x1e8   :  { %878 = vmatmul.mubr.bf16.vlgmr.msra.gmra.mrb[4].mxu0 %v275_v49 }
 0x1e9   :  { %917 = vmatprep.mubr.msk.bf16.mxu0 %vm1022_vm0, %v1021_v0  ;;  %902 = vmatpush3.bf16.msra.mxu0 %v978_v52 }
 0x1ea   :  { %903 = vmatprep.subr.bf16.mxu0 %v1021_v0 }
 0x1ed   :  { %904 = vmatpush3.bf16.msra.mxu0 %v979_v53 }
 0x1ee   :  { %905 = vmatprep.subr.bf16.mxu0 %v1021_v0 }
 0x1f1   :  { %906 = vmatpush3.bf16.msra.mxu0 %v980_v54 }
 0x1f2   :  { %907 = vmatprep.subr.bf16.mxu0 %v1021_v0 }
 0x1f5   :  { %908 = vmatpush3.bf16.msra.mxu0 %v981_v55 }
 0x1f6   :  { %909 = vmatprep.subr.bf16.mxu0 %v1021_v0 }
 0x1f9   :  { %910 = vmatpush3.bf16.msra.mxu0 %v982_v56 }
 0x1fa   :  { %911 = vmatprep.subr.bf16.mxu0 %v1021_v0 }
 0x1fd   :  { %912 = vmatpush3.bf16.msra.mxu0 %v983_v57 }
 0x1fe   :  { %913 = vmatprep.subr.bf16.mxu0 %v1021_v0 }
 0x201   :  { %914 = vmatpush3.bf16.msra.mxu0 %v984_v3 }
 0x202   :  { %915 = vmatprep.subr.bf16.mxu0 %v1021_v0 }
 0x205   :  { %916 = vmatpush3.bf16.msra.mxu0 %v985_v4 }
 0x2bb   :  { %v362_v59 = vpop.f32.mrb[4].mxu0 }
 0x2bc   :  { %v363_v60 = vadd.f32 %v731_v58, %v362_v59  ;;  %v879_v61 = vpop.f32.mrb[5].mxu0 }
 0x2bd   :  { %v365_v62 = vpop.f32.mrb[6].mxu0 }
 0x2be   :  { %v368_v63 = vmax.f32 %v363_v60, 0.0  ;;  %v880_v1 = vpop.f32.mrb[7].mxu0 }
 0x2c0   :  { %v387_v2 = vpack.c.bf16 %v368_v63, %v368_v63 }
 0x2c2   :  { %898 = vmatmul.mubr.bf16.vlgmr.msra.gmra.mrb[4].mxu1 %v387_v2 }
 0x2c3   :  { %937 = vmatprep.mubr.msk.bf16.mxu1 %vm1022_vm0, %v1021_v0  ;;  %922 = vmatpush3.bf16.msra.mxu1 %v986_v5 }
 0x2c4   :  { %923 = vmatprep.subr.bf16.mxu1 %v1021_v0 }
 0x2c7   :  { %924 = vmatpush3.bf16.msra.mxu1 %v987_v6 }
 0x2c8   :  { %925 = vmatprep.subr.bf16.mxu1 %v1021_v0 }
 0x2cb   :  { %926 = vmatpush3.bf16.msra.mxu1 %v988_v7 }
 0x2cc   :  { %927 = vmatprep.subr.bf16.mxu1 %v1021_v0 }
 0x2cf   :  { %928 = vmatpush3.bf16.msra.mxu1 %v989_v8 }
 0x2d0   :  { %929 = vmatprep.subr.bf16.mxu1 %v1021_v0 }
 0x2d3   :  { %930 = vmatpush3.bf16.msra.mxu1 %v990_v9 }
 0x2d4   :  { %931 = vmatprep.subr.bf16.mxu1 %v1021_v0 }
 0x2d7   :  { %932 = vmatpush3.bf16.msra.mxu1 %v991_v10 }
 0x2d8   :  { %933 = vmatprep.subr.bf16.mxu1 %v1021_v0 }
 0x2db   :  { %934 = vmatpush3.bf16.msra.mxu1 %v992_v19 }
 0x2dc   :  { %935 = vmatprep.subr.bf16.mxu1 %v1021_v0 }
 0x2df   :  { %936 = vmatpush3.bf16.msra.mxu1 %v993_v20 }
 0x395   :  { %v474_v12 = vpop.f32.mrb[4].mxu1 }
 0x396   :  { %v475_v13 = vadd.f32 %v740_v11, %v474_v12  ;;  %v899_v14 = vpop.f32.mrb[5].mxu1 }
 0x397   :  { %v477_v15 = vpop.f32.mrb[6].mxu1 }
 0x398   :  { %v480_v16 = vmax.f32 %v475_v13, 0.0  ;;  %v900_v17 = vpop.f32.mrb[7].mxu1 }
 0x39a   :  { %v499_v18 = vpack.c.bf16 %v480_v16, %v480_v16 }
 0x39c   :  { %918 = vmatmul.mubr.bf16.vlgmr.msra.gmra.mrb[8].mxu0 %v499_v18 }
 0x46f   :  { %v586_v22 = vpop.f32.mrb[8].mxu0 }
 0x470   :  { %v587_v23 = vadd.f32 %v749_v21, %v586_v22  ;;  %v919_v24 = vpop.f32.mrb[9].mxu0 }
 0x471   :  { %v589_v25 = vpop.f32.mrb[10].mxu0 }
 0x472   :  { %v592_v26 = vmax.f32 %v587_v23, 0.0  ;;  %v920_v27 = vpop.f32.mrb[11].mxu0 }
 0x474   :  { %v611_v28 = vpack.c.bf16 %v592_v26, %v592_v26 }
 0x476   :  { %938 = vmatmul.mubr.bf16.vlgmr.msra.gmra.mrb[8].mxu1 %v611_v28 }
 0x549   :  { %v698_v30 = vpop.f32.mrb[8].mxu1 }
 0x54a   :  { %v699_v0 = vadd.f32 %v758_v29, %v698_v30  ;;  %v939_v31 = vpop.f32.mrb[9].mxu1 }
 0x54b   :  { %v701_v32 = vpop.f32.mrb[10].mxu1 }
 0x54c   :  { %v704_v33 = vmax.f32 %v699_v0, 0.0  ;;  %v940_v34 = vpop.f32.mrb[11].mxu1 }
 0x54e   :  { %v705_v35 = vpack.c.bf16 %v704_v33, %v704_v33 }
 0x550   :  { %707 = vst.msk [vmem:[%s1143_s3] sm:$0xf] %vm706_vm2, %v705_v35 }
 0x551   :  { %712 = vsyncpa [#allocation4], 1 }

</bundles_post_ra>
